<compile_context>
chip_gen: v6e
topology: v6e:2x2x1
jax: 0.10.0
libtpu: 0.0.40
codegen_flags: <defaults>
</compile_context>

<pallas_src>
import math
import jax
import jax.numpy as jnp
from jax import lax
from jax.experimental import pallas as pl
from jax.experimental.pallas import tpu as pltpu


# ----------------------------------------------------------------------------
# Small padding helpers
# ----------------------------------------------------------------------------
def _round_up(n, m):
    return (n + m - 1) // m * m


def _pad_axis(a, axis, new_size):
    if a.shape[axis] == new_size:
        return a
    widths = [(0, 0)] * a.ndim
    widths[axis] = (0, new_size - a.shape[axis])
    return jnp.pad(a, widths)


def _pad_2d(a, shape):
    return jnp.pad(a, ((0, shape[0] - a.shape[0]), (0, shape[1] - a.shape[1])))


# ----------------------------------------------------------------------------
# Kernel: one RNN layer, one (batch-shard, time-chunk) grid step
# ----------------------------------------------------------------------------
def rnn_layer_kernel(x_ref, wih_hbm, whh_hbm, b_ref, y_ref,
                     wih_vmem, whh_vmem, z_scr, h_scr, sems):
    """Process one time chunk of one batch shard.

    x_ref   : (T, Bc, D)   input chunk (VMEM, pipelined)
    wih_hbm : (D, H)       input-to-hidden weight, transposed, in HBM
    whh_hbm : (H, H)       hidden-to-hidden weight, transposed, in HBM
    b_ref   : (1, H)       combined bias (b_ih + b_hh), f32
    y_ref   : (T, Bc, H)   output chunk (VMEM, pipelined)
    wih_vmem, whh_vmem     single-buffered VMEM copies of the weights
    z_scr   : (T, Bc, H)   f32 chunk of the hoisted input projection
    h_scr   : (Bc, H)      f32 hidden state carried across time chunks
    sems    : DMA semaphores for the weight staging copies
    """
    c = pl.program_id(1)          # time-chunk index (sequential, 'arbitrary')

    @pl.when(c == 0)
    def _():
        # Stage weights once per batch shard (single-buffered in VMEM) and
        # reset the recurrence: h_0 = zeros, as built in the module's forward().
        cp_ih = pltpu.make_async_copy(wih_hbm, wih_vmem, sems.at[0])
        cp_hh = pltpu.make_async_copy(whh_hbm, whh_vmem, sems.at[1])
        cp_ih.start()
        cp_hh.start()
        h_scr[...] = jnp.zeros_like(h_scr)
        cp_ih.wait()
        cp_hh.wait()

    T, B, D = x_ref.shape
    H = whh_vmem.shape[1]
    wdt = whh_vmem.dtype

    # ---- Hoisted input projection: one large MXU matmul for the whole chunk
    # (no time dependency, so it is off the per-timestep serial path).  The
    # combined bias is folded in here, not re-added every step.
    x2d = x_ref[...].reshape(T * B, D).astype(wdt)
    z2d = jnp.dot(x2d, wih_vmem[...],
                  preferred_element_type=jnp.float32) + b_ref[...]
    z_scr[...] = z2d.reshape(T, B, H)

    whh = whh_vmem[...]

    # ---- Serial recurrence over the chunk: h = tanh(z_t + h @ W_hh^T)
    def step(t, h):
        z_t = z_scr[t]                                            # (Bc, H) f32
        h = jnp.tanh(z_t + jnp.dot(h.astype(wdt), whh,
                                   preferred_element_type=jnp.float32))
        y_ref[t] = h.astype(y_ref.dtype)
        return h

    h_scr[...] = lax.fori_loop(0, T, step, h_scr[...], unroll=True)


# ----------------------------------------------------------------------------
# One layer over the full (padded) sequence
# ----------------------------------------------------------------------------
def rnn_layer_pallas(x_sbd, w_ih_t, w_hh_t, bias_2d, *,
                     time_chunk=32, batch_shards=1):
    """x_sbd: (S, B, D) padded so B%8==0, D%128==0.  Returns (Sp, B, H)."""
    S, B, D = x_sbd.shape
    H = w_hh_t.shape[1]
    assert B % batch_shards == 0
    Bc = B // batch_shards
    assert Bc % 8 == 0 and D % 128 == 0 and H % 128 == 0

    T = min(time_chunk, S)
    Sp = _round_up(S, T)
    x_sbd = _pad_axis(x_sbd, 0, Sp)          # zero-pad trailing timesteps

    io = jnp.dtype(x_sbd.dtype).itemsize
    wb = jnp.dtype(w_ih_t.dtype).itemsize
    need = (2 * T * Bc * D * io              # x chunks (double-buffered)
            + 2 * T * Bc * H * io            # y chunks (double-buffered)
            + 2 * H * 4                      # bias
            + (D * H + H * H) * wb           # staged weights (single-buffered)
            + (T * Bc * H + Bc * H) * 4)     # z + h scratch
    vmem_limit = min(max(int(1.5 * need) + (2 << 20), 4 << 20), 48 << 20)

    return pl.pallas_call(
        rnn_layer_kernel,
        out_shape=jax.ShapeDtypeStruct((Sp, B, H), x_sbd.dtype),
        grid_spec=pltpu.PrefetchScalarGridSpec(
            num_scalar_prefetch=0,
            grid=(batch_shards, Sp // T),
            in_specs=[
                pl.BlockSpec((T, Bc, D), lambda b, c: (c, b, 0)),
                pl.BlockSpec(memory_space=pl.ANY),      # W_ih^T stays in HBM
                pl.BlockSpec(memory_space=pl.ANY),      # W_hh^T stays in HBM
                pl.BlockSpec((1, H), lambda b, c: (0, 0)),
            ],
            out_specs=pl.BlockSpec((T, Bc, H), lambda b, c: (c, b, 0)),
            scratch_shapes=[
                pltpu.VMEM((D, H), w_ih_t.dtype),       # staged W_ih^T
                pltpu.VMEM((H, H), w_hh_t.dtype),       # staged W_hh^T
                pltpu.VMEM((T, Bc, H), jnp.float32),    # z chunk
                pltpu.VMEM((Bc, H), jnp.float32),       # hidden-state carry
                pltpu.SemaphoreType.DMA((2,)),
            ],
        ),
        compiler_params=pltpu.CompilerParams(
            # Batch shards are independent ('parallel', usable by v7x megacore);
            # time chunks carry the recurrence and MUST stay 'arbitrary'.
            dimension_semantics=("parallel", "arbitrary"),
            vmem_limit_bytes=vmem_limit,
        ),
    )(x_sbd, w_ih_t, w_hh_t, bias_2d)


# ----------------------------------------------------------------------------
# Parameter init (nn.RNN-style) and multi-layer forward
# ----------------------------------------------------------------------------
def init_rnn_params(key, input_size, hidden_size, num_layers, bias=True):
    """Deterministic nn.RNN-style init: U(-1/sqrt(H), 1/sqrt(H))."""
    params = []
    bound = 1.0 / math.sqrt(hidden_size)
    for layer in range(num_layers):
        in_dim = input_size if layer == 0 else hidden_size
        key, k1, k2, k3, k4 = jax.random.split(key, 5)
        w_ih = jax.random.uniform(k1, (hidden_size, in_dim), jnp.float32,
                                  -bound, bound)
        w_hh = jax.random.uniform(k2, (hidden_size, hidden_size), jnp.float32,
                                  -bound, bound)
        if bias:
            b_ih = jax.random.uniform(k3, (hidden_size,), jnp.float32,
                                      -bound, bound)
            b_hh = jax.random.uniform(k4, (hidden_size,), jnp.float32,
                                      -bound, bound)
        else:
            b_ih = jnp.zeros((hidden_size,), jnp.float32)
            b_hh = jnp.zeros((hidden_size,), jnp.float32)
        params.append((w_ih, w_hh, b_ih, b_hh))
    return params


def rnn_forward(x_bsd, params, *, time_chunk=32, batch_shards=1,
                param_dtype=jnp.float32):
    """Multi-layer tanh RNN forward.

    x_bsd : (batch, seq, input_size)  (batch-first, matching forward()'s use
            of input.size(0) as the batch dim)
    returns (output (batch, seq, hidden), h_n (num_layers, batch, hidden))

    param_dtype=jnp.bfloat16 runs the matmuls in bf16 on the MXU with f32
    accumulation; default f32 for bit-tight correctness at these shapes.
    """
    B, S, D_in = x_bsd.shape
    H = params[0][1].shape[0]

    # Pad to hardware tiles: batch -> x8 sublanes, features -> x128 lanes.
    Bp = _round_up(max(B, 8), 8)
    Dp = _round_up(max(D_in, 128), 128)
    Hp = _round_up(max(H, 128), 128)

    x = jnp.transpose(x_bsd, (1, 0, 2))          # (S, B, D) time-major
    x = _pad_axis(x, 1, Bp)
    x = _pad_axis(x, 2, Dp)

    h_n = []
    for li, (w_ih, w_hh, b_ih, b_hh) in enumerate(params):
        in_p = Dp if li == 0 else Hp
        w_ih_t = _pad_2d(jnp.transpose(w_ih), (in_p, Hp)).astype(param_dtype)
        w_hh_t = _pad_2d(jnp.transpose(w_hh), (Hp, Hp)).astype(param_dtype)
        b = _pad_axis((b_ih + b_hh).astype(jnp.float32).reshape(1, -1), 1, Hp)

        x = rnn_layer_pallas(x, w_ih_t, w_hh_t, b,
                             time_chunk=time_chunk, batch_shards=batch_shards)
        h_n.append(x[S - 1, :B, :H])             # last *valid* timestep

    out = jnp.transpose(x[:S, :B, :H], (1, 0, 2))
    return out, jnp.stack(h_n, axis=0)


def rnn_forward_ref(x_bsd, params):
    """Pure-JAX reference for correctness checking (unpadded)."""
    x = jnp.transpose(x_bsd, (1, 0, 2))
    h_n = []
    for (w_ih, w_hh, b_ih, b_hh) in params:
        S, B, _ = x.shape
        H = w_ih.shape[0]
        h = jnp.zeros((B, H), jnp.float32)
        ys = []
        for t in range(S):
            h = jnp.tanh(x[t] @ w_ih.T + b_ih + h @ w_hh.T + b_hh)
            ys.append(h)
        x = jnp.stack(ys, axis=0)
        h_n.append(h)
    return jnp.transpose(x, (1, 0, 2)), jnp.stack(h_n, axis=0)


if __name__ == "__main__":
    input_size, hidden_size, num_layers = 16, 32, 2
    batch, seq = 4, 8

    key = jax.random.PRNGKey(0)
    kx, kp = jax.random.split(key)
    x = jax.random.normal(kx, (batch, seq, input_size), jnp.float32)
    params = init_rnn_params(kp, input_size, hidden_size, num_layers, bias=True)

    out, h_n = rnn_forward(x, params)
    out = jax.block_until_ready(out)
    h_n = jax.block_until_ready(h_n)

    out_ref, h_n_ref = rnn_forward_ref(x, params)
    assert out.shape == (batch, seq, hidden_size)
    assert h_n.shape == (num_layers, batch, hidden_size)
    assert jnp.allclose(out, out_ref, atol=1e-4, rtol=1e-4)
    assert jnp.allclose(h_n, h_n_ref, atol=1e-4, rtol=1e-4)

    print("KERNEL_OK")
</pallas_src>

<mosaic_0001>
module attributes {stable_mosaic.version = 11 : i64} {
  func.func @rnn_layer_kernel(%arg0: i32, %arg1: i32, %arg2: memref<8x8x128xf32, #tpu.memory_space<vmem>>, %arg3: memref<128x128xf32, #tpu.memory_space<any>>, %arg4: memref<128x128xf32, #tpu.memory_space<any>>, %arg5: memref<1x128xf32, #tpu.memory_space<vmem>>, %arg6: memref<8x8x128xf32, #tpu.memory_space<vmem>>, %arg7: memref<128x128xf32, #tpu.memory_space<vmem>>, %arg8: memref<128x128xf32, #tpu.memory_space<vmem>>, %arg9: memref<8x8x128xf32, #tpu.memory_space<vmem>>, %arg10: memref<8x128xf32, #tpu.memory_space<vmem>>, %arg11: memref<2x!tpu.dma_semaphore, #tpu.memory_space<semaphore_mem>>) attributes {dimension_semantics = [#tpu.dimension_semantics<parallel>, #tpu.dimension_semantics<arbitrary>], iteration_bounds = array<i64: 1, 1>, scalar_prefetch = 0 : i64, scratch_operands = 5 : i64, tpu.core_type = #tpu.core_type<tc>, window_params = [{transform_indices = @transform_0, window_bounds = array<i64: 8, 8, 128>}, {}, {}, {pipeline_mode = #tpu.pipeline_mode<synchronous>, transform_indices = @transform_3, window_bounds = array<i64: 1, 128>}, {transform_indices = @transform_4, window_bounds = array<i64: 8, 8, 128>}]} {
    %c0_i32 = arith.constant 0 : i32
    %0 = arith.cmpi eq, %arg1, %c0_i32 : i32
    %1 = arith.extui %0 : i1 to i32
    %c0_i32_0 = arith.constant 0 : i32
    %2 = arith.cmpi ne, %1, %c0_i32_0 : i32
    scf.if %2 {
      %c0_i32_57 = arith.constant 0 : i32
      %95 = tpu.memref_slice %arg11[%c0_i32_57] : memref<2x!tpu.dma_semaphore, #tpu.memory_space<semaphore_mem>> -> memref<1x!tpu.dma_semaphore, #tpu.memory_space<semaphore_mem>>
      %96 = tpu.memref_squeeze %95 : memref<1x!tpu.dma_semaphore, #tpu.memory_space<semaphore_mem>> -> memref<!tpu.dma_semaphore, #tpu.memory_space<semaphore_mem>>
      tpu.enqueue_dma source(%arg3 : memref<128x128xf32, #tpu.memory_space<any>>) target(%arg7 : memref<128x128xf32, #tpu.memory_space<vmem>>) target_semaphore(%96 : memref<!tpu.dma_semaphore, #tpu.memory_space<semaphore_mem>>)
      %c1_i32_58 = arith.constant 1 : i32
      %97 = tpu.memref_slice %arg11[%c1_i32_58] : memref<2x!tpu.dma_semaphore, #tpu.memory_space<semaphore_mem>> -> memref<1x!tpu.dma_semaphore, #tpu.memory_space<semaphore_mem>>
      %98 = tpu.memref_squeeze %97 : memref<1x!tpu.dma_semaphore, #tpu.memory_space<semaphore_mem>> -> memref<!tpu.dma_semaphore, #tpu.memory_space<semaphore_mem>>
      tpu.enqueue_dma source(%arg4 : memref<128x128xf32, #tpu.memory_space<any>>) target(%arg8 : memref<128x128xf32, #tpu.memory_space<vmem>>) target_semaphore(%98 : memref<!tpu.dma_semaphore, #tpu.memory_space<semaphore_mem>>)
      %cst_59 = arith.constant 0.000000e+00 : f32
      %99 = vector.broadcast %cst_59 : f32 to vector<8x128xf32>
      %c0_60 = arith.constant 0 : index
      %c0_61 = arith.constant 0 : index
      %100 = vector.load %arg10[%c0_60, %c0_61] : memref<8x128xf32, #tpu.memory_space<vmem>>, vector<8x128xf32>
      tpu.vector_store %arg10[%c0_60, %c0_61], %99 {strides = array<i32>} : memref<8x128xf32, #tpu.memory_space<vmem>>, vector<8x128xf32>,
      %c0_i32_62 = arith.constant 0 : i32
      %101 = tpu.memref_slice %arg11[%c0_i32_62] : memref<2x!tpu.dma_semaphore, #tpu.memory_space<semaphore_mem>> -> memref<1x!tpu.dma_semaphore, #tpu.memory_space<semaphore_mem>>
      %102 = tpu.memref_squeeze %101 : memref<1x!tpu.dma_semaphore, #tpu.memory_space<semaphore_mem>> -> memref<!tpu.dma_semaphore, #tpu.memory_space<semaphore_mem>>
      tpu.wait_dma2 semaphore(%102 : memref<!tpu.dma_semaphore, #tpu.memory_space<semaphore_mem>>) src(%arg3 : memref<128x128xf32, #tpu.memory_space<any>>) dst(%arg7 : memref<128x128xf32, #tpu.memory_space<vmem>>)
      %c1_i32_63 = arith.constant 1 : i32
      %103 = tpu.memref_slice %arg11[%c1_i32_63] : memref<2x!tpu.dma_semaphore, #tpu.memory_space<semaphore_mem>> -> memref<1x!tpu.dma_semaphore, #tpu.memory_space<semaphore_mem>>
      %104 = tpu.memref_squeeze %103 : memref<1x!tpu.dma_semaphore, #tpu.memory_space<semaphore_mem>> -> memref<!tpu.dma_semaphore, #tpu.memory_space<semaphore_mem>>
      tpu.wait_dma2 semaphore(%104 : memref<!tpu.dma_semaphore, #tpu.memory_space<semaphore_mem>>) src(%arg4 : memref<128x128xf32, #tpu.memory_space<any>>) dst(%arg8 : memref<128x128xf32, #tpu.memory_space<vmem>>)
    } else {
    }
    %c0 = arith.constant 0 : index
    %c0_1 = arith.constant 0 : index
    %c0_2 = arith.constant 0 : index
    %3 = vector.load %arg2[%c0, %c0_1, %c0_2] : memref<8x8x128xf32, #tpu.memory_space<vmem>>, vector<8x8x128xf32>
    %4 = vector.shape_cast %3 : vector<8x8x128xf32> to vector<64x128xf32>
    %c0_3 = arith.constant 0 : index
    %c0_4 = arith.constant 0 : index
    %5 = vector.load %arg7[%c0_3, %c0_4] : memref<128x128xf32, #tpu.memory_space<vmem>>, vector<128x128xf32>
    %cst = arith.constant dense<0.000000e+00> : vector<64x128xf32>
    %6 = tpu.matmul %4, %5, %cst {dimension_numbers = #tpu.dot_dimension_numbers<[1], [0], [0], [1], [0, 0, 1, 1], [], []>} : vector<64x128xf32>, vector<128x128xf32>, vector<64x128xf32> -> vector<64x128xf32>
    %c0_5 = arith.constant 0 : index
    %c0_6 = arith.constant 0 : index
    %7 = vector.load %arg5[%c0_5, %c0_6] : memref<1x128xf32, #tpu.memory_space<vmem>>, vector<1x128xf32>
    %8 = vector.broadcast %7 : vector<1x128xf32> to vector<64x128xf32>
    %9 = arith.addf %6, %8 : vector<64x128xf32>
    %10 = vector.shape_cast %9 : vector<64x128xf32> to vector<8x8x128xf32>
    %c0_7 = arith.constant 0 : index
    %c0_8 = arith.constant 0 : index
    %c0_9 = arith.constant 0 : index
    %11 = vector.load %arg9[%c0_7, %c0_8, %c0_9] : memref<8x8x128xf32, #tpu.memory_space<vmem>>, vector<8x8x128xf32>
    tpu.vector_store %arg9[%c0_7, %c0_8, %c0_9], %10 {strides = array<i32>} : memref<8x8x128xf32, #tpu.memory_space<vmem>>, vector<8x8x128xf32>,
    %c0_10 = arith.constant 0 : index
    %c0_11 = arith.constant 0 : index
    %12 = vector.load %arg8[%c0_10, %c0_11] : memref<128x128xf32, #tpu.memory_space<vmem>>, vector<128x128xf32>
    %c0_12 = arith.constant 0 : index
    %c0_13 = arith.constant 0 : index
    %13 = vector.load %arg10[%c0_12, %c0_13] : memref<8x128xf32, #tpu.memory_space<vmem>>, vector<8x128xf32>
    %c0_i32_14 = arith.constant 0 : i32
    %14 = arith.index_cast %c0_i32_14 : i32 to index
    %c0_15 = arith.constant 0 : index
    %c0_16 = arith.constant 0 : index
    %15 = vector.load %arg9[%14, %c0_15, %c0_16] : memref<8x8x128xf32, #tpu.memory_space<vmem>>, vector<1x8x128xf32>
    %16 = vector.shape_cast %15 : vector<1x8x128xf32> to vector<8x128xf32>
    %cst_17 = arith.constant dense<0.000000e+00> : vector<8x128xf32>
    %17 = tpu.matmul %13, %12, %cst_17 {dimension_numbers = #tpu.dot_dimension_numbers<[1], [0], [0], [1], [0, 0, 1, 1], [], []>} : vector<8x128xf32>, vector<128x128xf32>, vector<8x128xf32> -> vector<8x128xf32>
    %18 = arith.addf %16, %17 : vector<8x128xf32>
    %19 = math.tanh %18 : vector<8x128xf32>
    %20 = arith.index_cast %c0_i32_14 : i32 to index
    %c0_18 = arith.constant 0 : index
    %c0_19 = arith.constant 0 : index
    %21 = vector.load %arg6[%20, %c0_18, %c0_19] : memref<8x8x128xf32, #tpu.memory_space<vmem>>, vector<1x8x128xf32>
    %22 = vector.shape_cast %21 : vector<1x8x128xf32> to vector<8x128xf32>
    %23 = vector.shape_cast %19 : vector<8x128xf32> to vector<1x8x128xf32>
    tpu.vector_store %arg6[%20, %c0_18, %c0_19], %23 {strides = array<i32>} : memref<8x8x128xf32, #tpu.memory_space<vmem>>, vector<1x8x128xf32>,
    %c1_i32 = arith.constant 1 : i32
    %24 = arith.index_cast %c1_i32 : i32 to index
    %c0_20 = arith.constant 0 : index
    %c0_21 = arith.constant 0 : index
    %25 = vector.load %arg9[%24, %c0_20, %c0_21] : memref<8x8x128xf32, #tpu.memory_space<vmem>>, vector<1x8x128xf32>
    %26 = vector.shape_cast %25 : vector<1x8x128xf32> to vector<8x128xf32>
    %cst_22 = arith.constant dense<0.000000e+00> : vector<8x128xf32>
    %27 = tpu.matmul %19, %12, %cst_22 {dimension_numbers = #tpu.dot_dimension_numbers<[1], [0], [0], [1], [0, 0, 1, 1], [], []>} : vector<8x128xf32>, vector<128x128xf32>, vector<8x128xf32> -> vector<8x128xf32>
    %28 = arith.addf %26, %27 : vector<8x128xf32>
    %29 = math.tanh %28 : vector<8x128xf32>
    %30 = arith.index_cast %c1_i32 : i32 to index
    %c0_23 = arith.constant 0 : index
    %c0_24 = arith.constant 0 : index
    %31 = vector.load %arg6[%30, %c0_23, %c0_24] : memref<8x8x128xf32, #tpu.memory_space<vmem>>, vector<1x8x128xf32>
    %32 = vector.shape_cast %31 : vector<1x8x128xf32> to vector<8x128xf32>
    %33 = vector.shape_cast %29 : vector<8x128xf32> to vector<1x8x128xf32>
    tpu.vector_store %arg6[%30, %c0_23, %c0_24], %33 {strides = array<i32>} : memref<8x8x128xf32, #tpu.memory_space<vmem>>, vector<1x8x128xf32>,
    %c2_i32 = arith.constant 2 : i32
    %34 = arith.index_cast %c2_i32 : i32 to index
    %c0_25 = arith.constant 0 : index
    %c0_26 = arith.constant 0 : index
    %35 = vector.load %arg9[%34, %c0_25, %c0_26] : memref<8x8x128xf32, #tpu.memory_space<vmem>>, vector<1x8x128xf32>
    %36 = vector.shape_cast %35 : vector<1x8x128xf32> to vector<8x128xf32>
    %cst_27 = arith.constant dense<0.000000e+00> : vector<8x128xf32>
    %37 = tpu.matmul %29, %12, %cst_27 {dimension_numbers = #tpu.dot_dimension_numbers<[1], [0], [0], [1], [0, 0, 1, 1], [], []>} : vector<8x128xf32>, vector<128x128xf32>, vector<8x128xf32> -> vector<8x128xf32>
    %38 = arith.addf %36, %37 : vector<8x128xf32>
    %39 = math.tanh %38 : vector<8x128xf32>
    %40 = arith.index_cast %c2_i32 : i32 to index
    %c0_28 = arith.constant 0 : index
    %c0_29 = arith.constant 0 : index
    %41 = vector.load %arg6[%40, %c0_28, %c0_29] : memref<8x8x128xf32, #tpu.memory_space<vmem>>, vector<1x8x128xf32>
    %42 = vector.shape_cast %41 : vector<1x8x128xf32> to vector<8x128xf32>
    %43 = vector.shape_cast %39 : vector<8x128xf32> to vector<1x8x128xf32>
    tpu.vector_store %arg6[%40, %c0_28, %c0_29], %43 {strides = array<i32>} : memref<8x8x128xf32, #tpu.memory_space<vmem>>, vector<1x8x128xf32>,
    %c3_i32 = arith.constant 3 : i32
    %44 = arith.index_cast %c3_i32 : i32 to index
    %c0_30 = arith.constant 0 : index
    %c0_31 = arith.constant 0 : index
    %45 = vector.load %arg9[%44, %c0_30, %c0_31] : memref<8x8x128xf32, #tpu.memory_space<vmem>>, vector<1x8x128xf32>
    %46 = vector.shape_cast %45 : vector<1x8x128xf32> to vector<8x128xf32>
    %cst_32 = arith.constant dense<0.000000e+00> : vector<8x128xf32>
    %47 = tpu.matmul %39, %12, %cst_32 {dimension_numbers = #tpu.dot_dimension_numbers<[1], [0], [0], [1], [0, 0, 1, 1], [], []>} : vector<8x128xf32>, vector<128x128xf32>, vector<8x128xf32> -> vector<8x128xf32>
    %48 = arith.addf %46, %47 : vector<8x128xf32>
    %49 = math.tanh %48 : vector<8x128xf32>
    %50 = arith.index_cast %c3_i32 : i32 to index
    %c0_33 = arith.constant 0 : index
    %c0_34 = arith.constant 0 : index
    %51 = vector.load %arg6[%50, %c0_33, %c0_34] : memref<8x8x128xf32, #tpu.memory_space<vmem>>, vector<1x8x128xf32>
    %52 = vector.shape_cast %51 : vector<1x8x128xf32> to vector<8x128xf32>
    %53 = vector.shape_cast %49 : vector<8x128xf32> to vector<1x8x128xf32>
    tpu.vector_store %arg6[%50, %c0_33, %c0_34], %53 {strides = array<i32>} : memref<8x8x128xf32, #tpu.memory_space<vmem>>, vector<1x8x128xf32>,
    %c4_i32 = arith.constant 4 : i32
    %54 = arith.index_cast %c4_i32 : i32 to index
    %c0_35 = arith.constant 0 : index
    %c0_36 = arith.constant 0 : index
    %55 = vector.load %arg9[%54, %c0_35, %c0_36] : memref<8x8x128xf32, #tpu.memory_space<vmem>>, vector<1x8x128xf32>
    %56 = vector.shape_cast %55 : vector<1x8x128xf32> to vector<8x128xf32>
    %cst_37 = arith.constant dense<0.000000e+00> : vector<8x128xf32>
    %57 = tpu.matmul %49, %12, %cst_37 {dimension_numbers = #tpu.dot_dimension_numbers<[1], [0], [0], [1], [0, 0, 1, 1], [], []>} : vector<8x128xf32>, vector<128x128xf32>, vector<8x128xf32> -> vector<8x128xf32>
    %58 = arith.addf %56, %57 : vector<8x128xf32>
    %59 = math.tanh %58 : vector<8x128xf32>
    %60 = arith.index_cast %c4_i32 : i32 to index
    %c0_38 = arith.constant 0 : index
    %c0_39 = arith.constant 0 : index
    %61 = vector.load %arg6[%60, %c0_38, %c0_39] : memref<8x8x128xf32, #tpu.memory_space<vmem>>, vector<1x8x128xf32>
    %62 = vector.shape_cast %61 : vector<1x8x128xf32> to vector<8x128xf32>
    %63 = vector.shape_cast %59 : vector<8x128xf32> to vector<1x8x128xf32>
    tpu.vector_store %arg6[%60, %c0_38, %c0_39], %63 {strides = array<i32>} : memref<8x8x128xf32, #tpu.memory_space<vmem>>, vector<1x8x128xf32>,
    %c5_i32 = arith.constant 5 : i32
    %64 = arith.index_cast %c5_i32 : i32 to index
    %c0_40 = arith.constant 0 : index
    %c0_41 = arith.constant 0 : index
    %65 = vector.load %arg9[%64, %c0_40, %c0_41] : memref<8x8x128xf32, #tpu.memory_space<vmem>>, vector<1x8x128xf32>
    %66 = vector.shape_cast %65 : vector<1x8x128xf32> to vector<8x128xf32>
    %cst_42 = arith.constant dense<0.000000e+00> : vector<8x128xf32>
    %67 = tpu.matmul %59, %12, %cst_42 {dimension_numbers = #tpu.dot_dimension_numbers<[1], [0], [0], [1], [0, 0, 1, 1], [], []>} : vector<8x128xf32>, vector<128x128xf32>, vector<8x128xf32> -> vector<8x128xf32>
    %68 = arith.addf %66, %67 : vector<8x128xf32>
    %69 = math.tanh %68 : vector<8x128xf32>
    %70 = arith.index_cast %c5_i32 : i32 to index
    %c0_43 = arith.constant 0 : index
    %c0_44 = arith.constant 0 : index
    %71 = vector.load %arg6[%70, %c0_43, %c0_44] : memref<8x8x128xf32, #tpu.memory_space<vmem>>, vector<1x8x128xf32>
    %72 = vector.shape_cast %71 : vector<1x8x128xf32> to vector<8x128xf32>
    %73 = vector.shape_cast %69 : vector<8x128xf32> to vector<1x8x128xf32>
    tpu.vector_store %arg6[%70, %c0_43, %c0_44], %73 {strides = array<i32>} : memref<8x8x128xf32, #tpu.memory_space<vmem>>, vector<1x8x128xf32>,
    %c6_i32 = arith.constant 6 : i32
    %74 = arith.index_cast %c6_i32 : i32 to index
    %c0_45 = arith.constant 0 : index
    %c0_46 = arith.constant 0 : index
    %75 = vector.load %arg9[%74, %c0_45, %c0_46] : memref<8x8x128xf32, #tpu.memory_space<vmem>>, vector<1x8x128xf32>
    %76 = vector.shape_cast %75 : vector<1x8x128xf32> to vector<8x128xf32>
    %cst_47 = arith.constant dense<0.000000e+00> : vector<8x128xf32>
    %77 = tpu.matmul %69, %12, %cst_47 {dimension_numbers = #tpu.dot_dimension_numbers<[1], [0], [0], [1], [0, 0, 1, 1], [], []>} : vector<8x128xf32>, vector<128x128xf32>, vector<8x128xf32> -> vector<8x128xf32>
    %78 = arith.addf %76, %77 : vector<8x128xf32>
    %79 = math.tanh %78 : vector<8x128xf32>
    %80 = arith.index_cast %c6_i32 : i32 to index
    %c0_48 = arith.constant 0 : index
    %c0_49 = arith.constant 0 : index
    %81 = vector.load %arg6[%80, %c0_48, %c0_49] : memref<8x8x128xf32, #tpu.memory_space<vmem>>, vector<1x8x128xf32>
    %82 = vector.shape_cast %81 : vector<1x8x128xf32> to vector<8x128xf32>
    %83 = vector.shape_cast %79 : vector<8x128xf32> to vector<1x8x128xf32>
    tpu.vector_store %arg6[%80, %c0_48, %c0_49], %83 {strides = array<i32>} : memref<8x8x128xf32, #tpu.memory_space<vmem>>, vector<1x8x128xf32>,
    %c7_i32 = arith.constant 7 : i32
    %84 = arith.index_cast %c7_i32 : i32 to index
    %c0_50 = arith.constant 0 : index
    %c0_51 = arith.constant 0 : index
    %85 = vector.load %arg9[%84, %c0_50, %c0_51] : memref<8x8x128xf32, #tpu.memory_space<vmem>>, vector<1x8x128xf32>
    %86 = vector.shape_cast %85 : vector<1x8x128xf32> to vector<8x128xf32>
    %cst_52 = arith.constant dense<0.000000e+00> : vector<8x128xf32>
    %87 = tpu.matmul %79, %12, %cst_52 {dimension_numbers = #tpu.dot_dimension_numbers<[1], [0], [0], [1], [0, 0, 1, 1], [], []>} : vector<8x128xf32>, vector<128x128xf32>, vector<8x128xf32> -> vector<8x128xf32>
    %88 = arith.addf %86, %87 : vector<8x128xf32>
    %89 = math.tanh %88 : vector<8x128xf32>
    %90 = arith.index_cast %c7_i32 : i32 to index
    %c0_53 = arith.constant 0 : index
    %c0_54 = arith.constant 0 : index
    %91 = vector.load %arg6[%90, %c0_53, %c0_54] : memref<8x8x128xf32, #tpu.memory_space<vmem>>, vector<1x8x128xf32>
    %92 = vector.shape_cast %91 : vector<1x8x128xf32> to vector<8x128xf32>
    %93 = vector.shape_cast %89 : vector<8x128xf32> to vector<1x8x128xf32>
    tpu.vector_store %arg6[%90, %c0_53, %c0_54], %93 {strides = array<i32>} : memref<8x8x128xf32, #tpu.memory_space<vmem>>, vector<1x8x128xf32>,
    %c8_i32 = arith.constant 8 : i32
    %c0_55 = arith.constant 0 : index
    %c0_56 = arith.constant 0 : index
    %94 = vector.load %arg10[%c0_55, %c0_56] : memref<8x128xf32, #tpu.memory_space<vmem>>, vector<8x128xf32>
    tpu.vector_store %arg10[%c0_55, %c0_56], %89 {strides = array<i32>} : memref<8x128xf32, #tpu.memory_space<vmem>>, vector<8x128xf32>,
    return
  }
  func.func @transform_0(%arg0: i32, %arg1: i32) -> (i32, i32, i32) {
    %c0_i32 = arith.constant 0 : i32
    %c0_i32_0 = arith.constant 0 : i32
    return %arg1, %arg0, %c0_i32 : i32, i32, i32
  }
  func.func @transform_3(%arg0: i32, %arg1: i32) -> (i32, i32) {
    %c0_i32 = arith.constant 0 : i32
    %c0_i32_0 = arith.constant 0 : i32
    %c0_i32_1 = arith.constant 0 : i32
    return %c0_i32, %c0_i32_0 : i32, i32
  }
  func.func @transform_4(%arg0: i32, %arg1: i32) -> (i32, i32, i32) {
    %c0_i32 = arith.constant 0 : i32
    %c0_i32_0 = arith.constant 0 : i32
    return %arg1, %arg0, %c0_i32 : i32, i32, i32
  }
}

</mosaic_0001>

<bundles_post_ra>
// kernel: tpu_custom_call.1
= control target key start
LH: loop header
LB: loop body
LE: loop exit
PB: predicated region body
PF: predicated region fallthrough
CT: control target
= control target key end

     0   :  { %9 = vsyncpa [#allocation8], 0  ;;  %s1842_s0 = inlined_call_operand.hbm [shape: f32[8,8,128], index: 0, kind: input, shape index: {}]   ;;  %s1843_s1 = inlined_call_operand.hbm [shape: f32[128,128], index: 1, kind: input, shape index: {}]   ;;  %s1844_s2 = inlined_call_operand.hbm [shape: f32[128,128], index: 2, kind: input, shape index: {}]   ;;  %s1845_s3 = inlined_call_operand.vmem [shape: f32[1,128], index: 3, kind: input, shape index: {}]   ;;  %s1846_s4 = inlined_call_operand.hbm [shape: f32[8,8,128], index: 4, kind: output, shape index: {}]  }
   0x1   :  { %10 = vsyncpa [#allocation9], 0  ;;  %s1458_s15 = smov [#allocation7]  }
   0x2   :  { %s16_s16 = sshll.u32 %s1458_s15, 4  ;;  %s17_s16 = int_to_ptr.vmem [resolvable:$true] %s16_s16 }
   0x3   :  { %s1378_s17 = scalar_lea.vmem %s17_s16, 1024  ;;  %p1383_p1 = scmp.lt.s32.totalorder %s17_s16, %s17_s16 }
   0x4   :  { %p1379_p0 = scmp.ne.s32.totalorder %s17_s16, %s1378_s17  ;;  %p1384_p2 = scmp.lt.s32.totalorder %s1378_s17, %s1378_s17 }
   0x6   :  { %p1385_p3 = por %p1384_p2, %p1383_p1 }
   0x8   :  { %p1386_p4 = pnand %p1385_p3, %p1379_p0 }
   0xa   :  { %1389 = shalt.err (!%p1386_p4)
}
   0xb   :  { %s1459_s18 = smov 128   ;;  %s1460_s19 = smov 8  }
   0xc   :  { %22 = dma.hbm_to_vmem [thread:$0]  %s1842_s0, 1024, %s17_s16, [#allocation8], %s1459_s18, %s1459_s18, %s1460_s19  }
   0xd   :  { %1450 = dma.done.wait [#allocation8], 1024  }
   0xe   :  { %1451 = vsyncadd [#allocation8], 4294966272  ;;  %s1461_s22 = smov [#allocation2]   ;;  %s1462_s24 = smov [#allocation3]  }
   0xf   :  { %s39_s23 = sshll.u32 %s1461_s22, 4  ;;  %s51_s25 = sshll.u32 %s1462_s24, 4  ;;  %s40_s23 = int_to_ptr.vmem [resolvable:$true] %s39_s23  ;;  %s52_s25 = int_to_ptr.vmem [resolvable:$true] %s51_s25 }
  0x10   :  { %s1398_s26 = scalar_lea.vmem %s40_s23, 2048  ;;  %p1403_p6 = scmp.lt.s32.totalorder %s40_s23, %s40_s23 }
  0x11   :  { %p1399_p5 = scmp.ne.s32.totalorder %s40_s23, %s1398_s26  ;;  %p1404_p7 = scmp.lt.s32.totalorder %s1398_s26, %s1398_s26 }
  0x13   :  { %p1405_p8 = por %p1404_p7, %p1403_p6 }
  0x15   :  { %p1406_p9 = pnand %p1405_p8, %p1399_p5 }
  0x17   :  { %1409 = shalt.err (!%p1406_p9)  }
  0x18   :  { %42 = dma.hbm_to_vmem [thread:$0]  %s1843_s1, 2048, %s40_s23, [#allocation6] }
  0x19   :  { %s1418_s0 = scalar_lea.vmem %s52_s25, 2048  ;;  %p1423_p11 = scmp.lt.s32.totalorder %s52_s25, %s52_s25 }
  0x1a   :  { %p1419_p10 = scmp.ne.s32.totalorder %s52_s25, %s1418_s0  ;;  %p1424_p12 = scmp.lt.s32.totalorder %s1418_s0, %s1418_s0 }
  0x1c   :  { %p1425_p13 = por %p1424_p12, %p1423_p11 }
  0x1e   :  { %p1426_p0 = pnand %p1425_p13, %p1419_p10 }
  0x20   :  { %1429 = shalt.err (!%p1426_p0)  }
  0x21   :  { %54 = dma.hbm_to_vmem [thread:$0]  %s1844_s2, 2048, %s52_s25, [#allocation6 + $0x1] }
  0x22   :  { %1452 = dma.done.wait [#allocation6], 2048 }
  0x23   :  { %1453 = vsyncadd [#allocation6], 4294965248 }
  0x24   :  { %1454 = dma.done.wait [#allocation6 + $0x1], 2048 }
  0x25   :  { %1455 = vsyncadd [#allocation6 + $0x1], 4294965248  ;;  %v1463_v0 = vmov 0.0   ;;  %vm1464_vm0 = vmmov 0   ;;  %v84_v1 = vld [vmem:[#allocation2 + $0x78] sm:$0xff]  ;;  %v83_v2 = vld [vmem:[#allocation2 + $0x70] sm:$0xff] }
  0x26   :  { %1066 = vmatprep.subr.mxu1 %v1463_v0  ;;  %1098 = vmatprep.mubr.msk.f32.mxu1 %vm1464_vm0, %v1463_v0  ;;  %v1506_v3 = vld [vmem:[#allocation3 + $0x78] sm:$0xff]  ;;  %v1509_v4 = vld [vmem:[#allocation3 + $0x70] sm:$0xff]  ;;  %v82_v5 = vld [vmem:[#allocation2 + $0x68] sm:$0xff] }
  0x27   :  { %1022 = vmatprep.subr.mxu0 %v84_v1  ;;  %1067 = vmatpush3.msra.mxu1 %v1506_v3  ;;  %v1512_v6 = vld [vmem:[#allocation3 + $0x68] sm:$0xff]  ;;  %v81_v7 = vld [vmem:[#allocation2 + $0x60] sm:$0xff]  ;;  %v80_v9 = vld [vmem:[#allocation2 + $0x58] sm:$0xff] }
  0x28   :  { %1023 = vmatpush3.msra.mxu0 %v84_v1  ;;  %1068 = vmatprep.subr.mxu1 %v1463_v0  ;;  %v1516_v8 = vld [vmem:[#allocation3 + $0x60] sm:$0xff]  ;;  %v1520_v10 = vld [vmem:[#allocation3 + $0x58] sm:$0xff]  ;;  %v79_v11 = vld [vmem:[#allocation2 + $0x50] sm:$0xff] }
  0x29   :  { %1024 = vmatprep.subr.mxu0 %v83_v2  ;;  %1069 = vmatpush3.msra.mxu1 %v1509_v4  ;;  %v1524_v12 = vld [vmem:[#allocation3 + $0x50] sm:$0xff]  ;;  %v78_v13 = vld [vmem:[#allocation2 + $0x48] sm:$0xff]  ;;  %v77_v15 = vld [vmem:[#allocation2 + $0x40] sm:$0xff] }
  0x2a   :  { %1025 = vmatpush3.msra.mxu0 %v83_v2  ;;  %1070 = vmatprep.subr.mxu1 %v1463_v0  ;;  %v1528_v14 = vld [vmem:[#allocation3 + $0x48] sm:$0xff]  ;;  %v1532_v16 = vld [vmem:[#allocation3 + $0x40] sm:$0xff]  ;;  %v76_v17 = vld [vmem:[#allocation2 + $0x38] sm:$0xff] }
  0x2b   :  { %1026 = vmatprep.subr.mxu0 %v82_v5  ;;  %1071 = vmatpush3.msra.mxu1 %v1512_v6  ;;  %v1536_v18 = vld [vmem:[#allocation3 + $0x38] sm:$0xff]  ;;  %v75_v19 = vld [vmem:[#allocation2 + $0x30] sm:$0xff]  ;;  %v74_v21 = vld [vmem:[#allocation2 + $0x28] sm:$0xff] }
  0x2c   :  { %1027 = vmatpush3.msra.mxu0 %v82_v5  ;;  %1072 = vmatprep.subr.mxu1 %v1463_v0  ;;  %v1540_v20 = vld [vmem:[#allocation3 + $0x30] sm:$0xff]  ;;  %v1544_v22 = vld [vmem:[#allocation3 + $0x28] sm:$0xff]  ;;  %v73_v23 = vld [vmem:[#allocation2 + $0x20] sm:$0xff] }
  0x2d   :  { %1028 = vmatprep.subr.mxu0 %v81_v7  ;;  %1073 = vmatpush3.msra.mxu1 %v1516_v8  ;;  %v1548_v24 = vld [vmem:[#allocation3 + $0x20] sm:$0xff]  ;;  %v72_v25 = vld [vmem:[#allocation2 + $0x18] sm:$0xff]  ;;  %v71_v27 = vld [vmem:[#allocation2 + $0x10] sm:$0xff] }
  0x2e   :  { %1029 = vmatpush3.msra.mxu0 %v81_v7  ;;  %1074 = vmatprep.subr.mxu1 %v1463_v0  ;;  %v1552_v26 = vld [vmem:[#allocation3 + $0x18] sm:$0xff]  ;;  %v1556_v28 = vld [vmem:[#allocation3 + $0x10] sm:$0xff]  ;;  %v70_v29 = vld [vmem:[#allocation2 + $0x8] sm:$0xff] }
  0x2f   :  { %1030 = vmatprep.subr.mxu0 %v80_v9  ;;  %1075 = vmatpush3.msra.mxu1 %v1520_v10  ;;  %v61_v30 = vld [vmem:[#allocation7] sm:$0xff]  ;;  %v1561_v31 = vld [vmem:[#allocation3 + $0x8] sm:$0xff]  ;;  %v63_v35 = vld [vmem:[#allocation7 + $0x10] sm:$0xff] }
  0x30   :  { %1031 = vmatpush3.msra.mxu0 %v80_v9  ;;  %1076 = vmatprep.subr.mxu1 %v1463_v0  ;;  %v69_v32 = vld [vmem:[#allocation2] sm:$0xff]  ;;  %v62_v34 = vld [vmem:[#allocation7 + $0x8] sm:$0xff]  ;;  %v64_v36 = vld [vmem:[#allocation7 + $0x18] sm:$0xff] }
  0x31   :  { %1032 = vmatprep.subr.mxu0 %v79_v11  ;;  %1077 = vmatpush3.msra.mxu1 %v1524_v12  ;;  %v1564_v33 = vld [vmem:[#allocation3] sm:$0xff]  ;;  %v66_v38 = vld [vmem:[#allocation7 + $0x28] sm:$0xff]  ;;  %v67_v39 = vld [vmem:[#allocation7 + $0x30] sm:$0xff] }
  0x32   :  { %1033 = vmatpush3.msra.mxu0 %v79_v11  ;;  %1078 = vmatprep.subr.mxu1 %v1463_v0  ;;  %v65_v37 = vld [vmem:[#allocation7 + $0x20] sm:$0xff]  ;;  %v68_v40 = vld [vmem:[#allocation7 + $0x38] sm:$0xff] }
  0x33   :  { %1034 = vmatprep.subr.mxu0 %v78_v13  ;;  %1079 = vmatpush3.msra.mxu1 %v1528_v14  ;;  %v1643_v43 = vld [vmem:[%s1845_s3] ss:$0 sm:$0xff]  ;;  %s1465_s3 = smov [#allocation10]  }
  0x34   :  { %1035 = vmatpush3.msra.mxu0 %v78_v13  ;;  %1080 = vmatprep.subr.mxu1 %v1463_v0  ;;  %s834_s5 = sshll.u32 %s1465_s3, 4  ;;  %s835_s5 = int_to_ptr.vmem [resolvable:$true] %s834_s5 }
  0x35   :  { %1036 = vmatprep.subr.mxu0 %v77_v15  ;;  %1081 = vmatpush3.msra.mxu1 %v1532_v16  ;;  %s1430_s6 = scalar_lea.vmem %s835_s5, 1024  ;;  %p1435_p2 = scmp.lt.s32.totalorder %s835_s5, %s835_s5 }
  0x36   :  { %1037 = vmatpush3.msra.mxu0 %v77_v15  ;;  %1082 = vmatprep.subr.mxu1 %v1463_v0  ;;  %p1431_p1 = scmp.ne.s32.totalorder %s835_s5, %s1430_s6  ;;  %p1436_p3 = scmp.lt.s32.totalorder %s1430_s6, %s1430_s6 }
  0x37   :  { %1038 = vmatprep.subr.mxu0 %v76_v17  ;;  %1083 = vmatpush3.msra.mxu1 %v1536_v18 }
  0x38   :  { %1039 = vmatpush3.msra.mxu0 %v76_v17  ;;  %1084 = vmatprep.subr.mxu1 %v1463_v0  ;;  %p1437_p4 = por %p1436_p3, %p1435_p2 }
  0x39   :  { %1040 = vmatprep.subr.mxu0 %v75_v19  ;;  %1085 = vmatpush3.msra.mxu1 %v1540_v20 }
  0x3a   :  { %1041 = vmatpush3.msra.mxu0 %v75_v19  ;;  %1086 = vmatprep.subr.mxu1 %v1463_v0  ;;  %p1438_p5 = pnand %p1437_p4, %p1431_p1 }
  0x3b   :  { %1042 = vmatprep.subr.mxu0 %v74_v21  ;;  %1087 = vmatpush3.msra.mxu1 %v1544_v22 }
  0x3c   :  { %1043 = vmatpush3.msra.mxu0 %v74_v21  ;;  %1088 = vmatprep.subr.mxu1 %v1463_v0 }
  0x3d   :  { %1044 = vmatprep.subr.mxu0 %v73_v23  ;;  %1089 = vmatpush3.msra.mxu1 %v1548_v24 }
  0x3e   :  { %1045 = vmatpush3.msra.mxu0 %v73_v23  ;;  %1090 = vmatprep.subr.mxu1 %v1463_v0 }
  0x3f   :  { %1046 = vmatprep.subr.mxu0 %v72_v25  ;;  %1091 = vmatpush3.msra.mxu1 %v1552_v26 }
  0x40   :  { %1047 = vmatpush3.msra.mxu0 %v72_v25  ;;  %1092 = vmatprep.subr.mxu1 %v1463_v0 }
  0x41   :  { %1048 = vmatprep.subr.mxu0 %v71_v27  ;;  %1093 = vmatpush3.msra.mxu1 %v1556_v28 }
  0x42   :  { %1049 = vmatpush3.msra.mxu0 %v71_v27  ;;  %1094 = vmatprep.subr.mxu1 %v1463_v0 }
  0x43   :  { %1050 = vmatprep.subr.mxu0 %v70_v29  ;;  %1054 = vmatprep.mubr.f32.mxu0 %v61_v30 }
  0x44   :  { %1051 = vmatpush3.msra.mxu0 %v70_v29  ;;  %1095 = vmatpush3.msra.mxu1 %v1561_v31 }
  0x45   :  { %1052 = vmatprep.subr.mxu0 %v69_v32  ;;  %1096 = vmatprep.subr.mxu1 %v1463_v0 }
  0x46   :  { %1053 = vmatpush3.msra.mxu0 %v69_v32  ;;  %1097 = vmatpush3.msra.mxu1 %v1564_v33 }
  0x47   :  { %1055 = vmatmul.mubr.f32.vlgmr.msra.gmra.mxu0 %v62_v34  ;;  %1099 = vmatmul.mubr.f32.vlgmr.msra.gmra.mxu1 %v1463_v0 }
  0x48   :  { %1101 = vmatprep.subr.mxu0 %v1463_v0  ;;  %1136 = vmatprep.subr.mxu1 %v1463_v0 }
  0x49   :  { %1102 = vmatpush3.msra.mxu0 %v1506_v3  ;;  %1137 = vmatpush3.msra.mxu1 %v1506_v3 }
  0x4a   :  { %1103 = vmatprep.subr.mxu0 %v1463_v0  ;;  %1138 = vmatprep.subr.mxu1 %v1463_v0 }
  0x4b   :  { %1104 = vmatpush3.msra.mxu0 %v1509_v4  ;;  %1139 = vmatpush3.msra.mxu1 %v1509_v4 }
  0x4c   :  { %1105 = vmatprep.subr.mxu0 %v1463_v0  ;;  %1140 = vmatprep.subr.mxu1 %v1463_v0 }
  0x4d   :  { %1106 = vmatpush3.msra.mxu0 %v1512_v6  ;;  %1141 = vmatpush3.msra.mxu1 %v1512_v6 }
  0x4e   :  { %1107 = vmatprep.subr.mxu0 %v1463_v0  ;;  %1142 = vmatprep.subr.mxu1 %v1463_v0 }
  0x4f   :  { %1108 = vmatpush3.msra.mxu0 %v1516_v8  ;;  %1143 = vmatpush3.msra.mxu1 %v1516_v8 }
  0x50   :  { %1109 = vmatprep.subr.mxu0 %v1463_v0  ;;  %1144 = vmatprep.subr.mxu1 %v1463_v0 }
  0x51   :  { %1110 = vmatpush3.msra.mxu0 %v1520_v10  ;;  %1145 = vmatpush3.msra.mxu1 %v1520_v10 }
  0x52   :  { %1111 = vmatprep.subr.mxu0 %v1463_v0  ;;  %1146 = vmatprep.subr.mxu1 %v1463_v0 }
  0x53   :  { %1112 = vmatpush3.msra.mxu0 %v1524_v12  ;;  %1147 = vmatpush3.msra.mxu1 %v1524_v12 }
  0x54   :  { %1113 = vmatprep.subr.mxu0 %v1463_v0  ;;  %1148 = vmatprep.subr.mxu1 %v1463_v0 }
  0x55   :  { %1114 = vmatpush3.msra.mxu0 %v1528_v14  ;;  %1149 = vmatpush3.msra.mxu1 %v1528_v14 }
  0x56   :  { %1115 = vmatprep.subr.mxu0 %v1463_v0  ;;  %1150 = vmatprep.subr.mxu1 %v1463_v0 }
  0x57   :  { %1116 = vmatpush3.msra.mxu0 %v1532_v16  ;;  %1151 = vmatpush3.msra.mxu1 %v1532_v16 }
  0x58   :  { %1117 = vmatprep.subr.mxu0 %v1463_v0  ;;  %1152 = vmatprep.subr.mxu1 %v1463_v0 }
  0x59   :  { %1118 = vmatpush3.msra.mxu0 %v1536_v18  ;;  %1153 = vmatpush3.msra.mxu1 %v1536_v18 }
  0x5a   :  { %1119 = vmatprep.subr.mxu0 %v1463_v0  ;;  %1154 = vmatprep.subr.mxu1 %v1463_v0 }
  0x5b   :  { %1120 = vmatpush3.msra.mxu0 %v1540_v20  ;;  %1155 = vmatpush3.msra.mxu1 %v1540_v20 }
  0x5c   :  { %1121 = vmatprep.subr.mxu0 %v1463_v0  ;;  %1156 = vmatprep.subr.mxu1 %v1463_v0 }
  0x5d   :  { %1122 = vmatpush3.msra.mxu0 %v1544_v22  ;;  %1157 = vmatpush3.msra.mxu1 %v1544_v22 }
  0x5e   :  { %1123 = vmatprep.subr.mxu0 %v1463_v0  ;;  %1158 = vmatprep.subr.mxu1 %v1463_v0 }
  0x5f   :  { %1124 = vmatpush3.msra.mxu0 %v1548_v24  ;;  %1159 = vmatpush3.msra.mxu1 %v1548_v24 }
  0x60   :  { %1125 = vmatprep.subr.mxu0 %v1463_v0  ;;  %1160 = vmatprep.subr.mxu1 %v1463_v0 }
  0x61   :  { %1126 = vmatpush3.msra.mxu0 %v1552_v26  ;;  %1161 = vmatpush3.msra.mxu1 %v1552_v26 }
  0x62   :  { %1127 = vmatprep.subr.mxu0 %v1463_v0  ;;  %1162 = vmatprep.subr.mxu1 %v1463_v0 }
  0x63   :  { %1128 = vmatpush3.msra.mxu0 %v1556_v28  ;;  %1163 = vmatpush3.msra.mxu1 %v1556_v28 }
  0x64   :  { %1129 = vmatprep.subr.mxu0 %v1463_v0  ;;  %1164 = vmatprep.subr.mxu1 %v1463_v0 }
  0x65   :  { %1130 = vmatpush3.msra.mxu0 %v1561_v31  ;;  %1165 = vmatpush3.msra.mxu1 %v1561_v31 }
  0x66   :  { %1131 = vmatprep.subr.mxu0 %v1463_v0  ;;  %1166 = vmatprep.subr.mxu1 %v1463_v0 }
  0x67   :  { %1132 = vmatpush3.msra.mxu0 %v1564_v33  ;;  %1167 = vmatpush3.msra.mxu1 %v1564_v33 }
  0x68   :  { %1168 = vmatprep.mubr.msk.f32.mxu1 %vm1464_vm0, %v1463_v0  ;;  %1171 = vmatprep.subr.mxu0 %v1463_v0 }
  0x69   :  { %1206 = vmatprep.subr.mxu1 %v1463_v0  ;;  %1057 = vmatprep.mubr.f32.mxu0 %v63_v35 }
  0x6a   :  { %1058 = vmatmul.mubr.f32.gmra.mxu0 %v64_v36 }
  0x6b   :  { %1060 = vmatprep.mubr.f32.mxu0 %v65_v37 }
  0x6e   :  { %1061 = vmatmul.mubr.f32.gmra.mxu0 %v66_v38 }
  0x6f   :  { %1063 = vmatprep.mubr.f32.mxu0 %v67_v39 }
  0x72   :  { %1064 = vmatmul.mubr.f32.gmra.mxu0 %v68_v40 }
  0x73   :  { %1133 = vmatprep.mubr.msk.f32.mxu0 %vm1464_vm0, %v1463_v0 }
 0x107   :  { %v1056_v41 = vpop.f32.mrf.mxu0  ;;  %v289_v42 = vpop.f32.mrf.mxu1 }
 0x108   :  { %v164_v55 = vadd.f32 %v1056_v41, %v1643_v43 }
 0x109   :  { %v158_v44 = vpop.f32.mrf.mxu0  ;;  %v1100_v45 = vpop.f32.mrf.mxu1 }
 0x10a   :  { %v159_v46 = vadd.f32 %v1643_v43, %v158_v44 }
 0x10c   :  { %v293_v47 = vadd.f32 %v289_v42, %v159_v46 }
 0x10e   :  { %1354 = vtanh.f32 %v293_v47 }
 0x11b   :  { %v1355_v48 = vpop.eup %1354 }
 0x11c   :  { %295 = vst [vmem:[#allocation10] sm:$0xff] %v1355_v48  ;;  %1134 = vmatmul.mubr.f32.vlgmr.msra.gmra.mxu0 %v1355_v48 }
 0x11d   :  { %1172 = vmatpush3.msra.mxu0 %v1506_v3  ;;  %1203 = vmatprep.mubr.msk.f32.mxu0 %vm1464_vm0, %v1463_v0 }
 0x11e   :  { %1173 = vmatprep.subr.mxu0 %v1463_v0 }
 0x11f   :  { %1174 = vmatpush3.msra.mxu0 %v1509_v4 }
 0x120   :  { %1175 = vmatprep.subr.mxu0 %v1463_v0 }
 0x121   :  { %1176 = vmatpush3.msra.mxu0 %v1512_v6 }
 0x122   :  { %1177 = vmatprep.subr.mxu0 %v1463_v0 }
 0x123   :  { %1178 = vmatpush3.msra.mxu0 %v1516_v8 }
 0x124   :  { %1179 = vmatprep.subr.mxu0 %v1463_v0 }
 0x125   :  { %1180 = vmatpush3.msra.mxu0 %v1520_v10 }
 0x126   :  { %1181 = vmatprep.subr.mxu0 %v1463_v0 }
 0x127   :  { %1182 = vmatpush3.msra.mxu0 %v1524_v12 }
 0x128   :  { %1183 = vmatprep.subr.mxu0 %v1463_v0 }
 0x129   :  { %1184 = vmatpush3.msra.mxu0 %v1528_v14 }
 0x12a   :  { %1185 = vmatprep.subr.mxu0 %v1463_v0  ;;  %v1680_v49 = vpop.f32.mrf.mxu0 }
 0x12b   :  { %1186 = vmatpush3.msra.mxu0 %v1532_v16  ;;  %v174_v2 = vadd.f32 %v1680_v49, %v1643_v43 }
 0x12c   :  { %1187 = vmatprep.subr.mxu0 %v1463_v0  ;;  %v168_v50 = vpop.f32.mrf.mxu0 }
 0x12d   :  { %1188 = vmatpush3.msra.mxu0 %v1536_v18  ;;  %v169_v60 = vadd.f32 %v1643_v43, %v168_v50 }
 0x12e   :  { %1189 = vmatprep.subr.mxu0 %v1463_v0  ;;  %v1682_v51 = vpop.f32.mrf.mxu0 }
 0x12f   :  { %1190 = vmatpush3.msra.mxu0 %v1540_v20 }
 0x130   :  { %1191 = vmatprep.subr.mxu0 %v1463_v0  ;;  %v1684_v52 = vpop.f32.mrf.mxu0 }
 0x131   :  { %1192 = vmatpush3.msra.mxu0 %v1544_v22  ;;  %v179_v13 = vadd.f32 %v1643_v43, %v1684_v52 }
 0x132   :  { %1193 = vmatprep.subr.mxu0 %v1463_v0  ;;  %v1686_v53 = vpop.f32.mrf.mxu0 }
 0x133   :  { %1194 = vmatpush3.msra.mxu0 %v1548_v24 }
 0x134   :  { %1195 = vmatprep.subr.mxu0 %v1463_v0  ;;  %v1688_v54 = vpop.f32.mrf.mxu0 }
 0x135   :  { %1196 = vmatpush3.msra.mxu0 %v1552_v26 }
 0x136   :  { %1197 = vmatprep.subr.mxu0 %v1463_v0 }
 0x137   :  { %1198 = vmatpush3.msra.mxu0 %v1556_v28 }
 0x138   :  { %1199 = vmatprep.subr.mxu0 %v1463_v0 }
 0x139   :  { %1200 = vmatpush3.msra.mxu0 %v1561_v31 }
 0x13a   :  { %1201 = vmatprep.subr.mxu0 %v1463_v0 }
 0x13b   :  { %1202 = vmatpush3.msra.mxu0 %v1564_v33 }
 0x13c   :  { %1241 = vmatprep.subr.mxu0 %v1463_v0 }
 0x1dc   :  { %v364_v56 = vpop.f32.mrf.mxu0 }
 0x1dd   :  { %v368_v57 = vadd.f32 %v364_v56, %v164_v55 }
 0x1de   :  { %v1135_v58 = vpop.f32.mrf.mxu0 }
 0x1df   :  { %1356 = vtanh.f32 %v368_v57 }
 0x1ec   :  { %v1357_v59 = vpop.eup %1356 }
 0x1ed   :  { %371 = vst [vmem:[#allocation10 + $0x8] sm:$0xff] %v1357_v59  ;;  %1169 = vmatmul.mubr.f32.vlgmr.msra.gmra.mxu1 %v1357_v59 }
 0x1ee   :  { %1207 = vmatpush3.msra.mxu1 %v1506_v3  ;;  %1238 = vmatprep.mubr.msk.f32.mxu1 %vm1464_vm0, %v1463_v0 }
 0x1ef   :  { %1208 = vmatprep.subr.mxu1 %v1463_v0 }
 0x1f0   :  { %1209 = vmatpush3.msra.mxu1 %v1509_v4 }
 0x1f1   :  { %1210 = vmatprep.subr.mxu1 %v1463_v0 }
 0x1f2   :  { %1211 = vmatpush3.msra.mxu1 %v1512_v6 }
 0x1f3   :  { %1212 = vmatprep.subr.mxu1 %v1463_v0 }
 0x1f4   :  { %1213 = vmatpush3.msra.mxu1 %v1516_v8 }
 0x1f5   :  { %1214 = vmatprep.subr.mxu1 %v1463_v0 }
 0x1f6   :  { %1215 = vmatpush3.msra.mxu1 %v1520_v10 }
 0x1f7   :  { %1216 = vmatprep.subr.mxu1 %v1463_v0 }
 0x1f8   :  { %1217 = vmatpush3.msra.mxu1 %v1524_v12 }
 0x1f9   :  { %1218 = vmatprep.subr.mxu1 %v1463_v0 }
 0x1fa   :  { %1219 = vmatpush3.msra.mxu1 %v1528_v14 }
 0x1fb   :  { %1220 = vmatprep.subr.mxu1 %v1463_v0 }
 0x1fc   :  { %1221 = vmatpush3.msra.mxu1 %v1532_v16 }
 0x1fd   :  { %1222 = vmatprep.subr.mxu1 %v1463_v0 }
 0x1fe   :  { %1223 = vmatpush3.msra.mxu1 %v1536_v18 }
 0x1ff   :  { %1224 = vmatprep.subr.mxu1 %v1463_v0 }
 0x200   :  { %1225 = vmatpush3.msra.mxu1 %v1540_v20 }
 0x201   :  { %1226 = vmatprep.subr.mxu1 %v1463_v0 }
 0x202   :  { %1227 = vmatpush3.msra.mxu1 %v1544_v22 }
 0x203   :  { %1228 = vmatprep.subr.mxu1 %v1463_v0 }
 0x204   :  { %1229 = vmatpush3.msra.mxu1 %v1548_v24 }
 0x205   :  { %1230 = vmatprep.subr.mxu1 %v1463_v0 }
 0x206   :  { %1231 = vmatpush3.msra.mxu1 %v1552_v26 }
 0x207   :  { %1232 = vmatprep.subr.mxu1 %v1463_v0 }
 0x208   :  { %1233 = vmatpush3.msra.mxu1 %v1556_v28 }
 0x209   :  { %1234 = vmatprep.subr.mxu1 %v1463_v0 }
 0x20a   :  { %1235 = vmatpush3.msra.mxu1 %v1561_v31 }
 0x20b   :  { %1236 = vmatprep.subr.mxu1 %v1463_v0 }
 0x20c   :  { %1237 = vmatpush3.msra.mxu1 %v1564_v33 }
 0x20d   :  { %1276 = vmatprep.subr.mxu1 %v1463_v0 }
 0x2ad   :  { %v440_v61 = vpop.f32.mrf.mxu1 }
 0x2ae   :  { %v444_v62 = vadd.f32 %v440_v61, %v169_v60 }
 0x2af   :  { %v1170_v63 = vpop.f32.mrf.mxu1 }
 0x2b0   :  { %1358 = vtanh.f32 %v444_v62 }
 0x2bd   :  { %v1359_v1 = vpop.eup %1358 }
 0x2be   :  { %447 = vst [vmem:[#allocation10 + $0x10] sm:$0xff] %v1359_v1  ;;  %1204 = vmatmul.mubr.f32.vlgmr.msra.gmra.mxu0 %v1359_v1 }
 0x2bf   :  { %1242 = vmatpush3.msra.mxu0 %v1506_v3  ;;  %1273 = vmatprep.mubr.msk.f32.mxu0 %vm1464_vm0, %v1463_v0 }
 0x2c0   :  { %1243 = vmatprep.subr.mxu0 %v1463_v0 }
 0x2c1   :  { %1244 = vmatpush3.msra.mxu0 %v1509_v4 }
 0x2c2   :  { %1245 = vmatprep.subr.mxu0 %v1463_v0 }
 0x2c3   :  { %1246 = vmatpush3.msra.mxu0 %v1512_v6 }
 0x2c4   :  { %1247 = vmatprep.subr.mxu0 %v1463_v0 }
 0x2c5   :  { %1248 = vmatpush3.msra.mxu0 %v1516_v8 }
 0x2c6   :  { %1249 = vmatprep.subr.mxu0 %v1463_v0 }
 0x2c7   :  { %1250 = vmatpush3.msra.mxu0 %v1520_v10 }
 0x2c8   :  { %1251 = vmatprep.subr.mxu0 %v1463_v0 }
 0x2c9   :  { %1252 = vmatpush3.msra.mxu0 %v1524_v12 }
 0x2ca   :  { %1253 = vmatprep.subr.mxu0 %v1463_v0 }
 0x2cb   :  { %1254 = vmatpush3.msra.mxu0 %v1528_v14 }
 0x2cc   :  { %1255 = vmatprep.subr.mxu0 %v1463_v0 }
 0x2cd   :  { %1256 = vmatpush3.msra.mxu0 %v1532_v16 }
 0x2ce   :  { %1257 = vmatprep.subr.mxu0 %v1463_v0 }
 0x2cf   :  { %1258 = vmatpush3.msra.mxu0 %v1536_v18 }
 0x2d0   :  { %1259 = vmatprep.subr.mxu0 %v1463_v0 }
 0x2d1   :  { %1260 = vmatpush3.msra.mxu0 %v1540_v20 }
 0x2d2   :  { %1261 = vmatprep.subr.mxu0 %v1463_v0 }
 0x2d3   :  { %1262 = vmatpush3.msra.mxu0 %v1544_v22 }
 0x2d4   :  { %1263 = vmatprep.subr.mxu0 %v1463_v0 }
 0x2d5   :  { %1264 = vmatpush3.msra.mxu0 %v1548_v24 }
 0x2d6   :  { %1265 = vmatprep.subr.mxu0 %v1463_v0 }
 0x2d7   :  { %1266 = vmatpush3.msra.mxu0 %v1552_v26 }
 0x2d8   :  { %1267 = vmatprep.subr.mxu0 %v1463_v0 }
 0x2d9   :  { %1268 = vmatpush3.msra.mxu0 %v1556_v28 }
 0x2da   :  { %1269 = vmatprep.subr.mxu0 %v1463_v0 }
 0x2db   :  { %1270 = vmatpush3.msra.mxu0 %v1561_v31 }
 0x2dc   :  { %1271 = vmatprep.subr.mxu0 %v1463_v0 }
 0x2dd   :  { %1272 = vmatpush3.msra.mxu0 %v1564_v33 }
 0x2de   :  { %1311 = vmatprep.subr.mxu0 %v1463_v0 }
 0x37e   :  { %v516_v5 = vpop.f32.mrf.mxu0 }
 0x37f   :  { %v520_v7 = vadd.f32 %v516_v5, %v174_v2 }
 0x380   :  { %v1205_v9 = vpop.f32.mrf.mxu0 }
 0x381   :  { %1360 = vtanh.f32 %v520_v7 }
 0x38e   :  { %v1361_v11 = vpop.eup %1360 }
 0x38f   :  { %523 = vst [vmem:[#allocation10 + $0x18] sm:$0xff] %v1361_v11  ;;  %1239 = vmatmul.mubr.f32.vlgmr.msra.gmra.mxu1 %v1361_v11 }
 0x390   :  { %1277 = vmatpush3.msra.mxu1 %v1506_v3  ;;  %1308 = vmatprep.mubr.msk.f32.mxu1 %vm1464_vm0, %v1463_v0 }
 0x391   :  { %1278 = vmatprep.subr.mxu1 %v1463_v0 }
 0x392   :  { %1279 = vmatpush3.msra.mxu1 %v1509_v4 }
 0x393   :  { %1280 = vmatprep.subr.mxu1 %v1463_v0 }
 0x394   :  { %1281 = vmatpush3.msra.mxu1 %v1512_v6 }
 0x395   :  { %1282 = vmatprep.subr.mxu1 %v1463_v0 }
 0x396   :  { %1283 = vmatpush3.msra.mxu1 %v1516_v8 }
 0x397   :  { %1284 = vmatprep.subr.mxu1 %v1463_v0 }
 0x398   :  { %1285 = vmatpush3.msra.mxu1 %v1520_v10 }
 0x399   :  { %1286 = vmatprep.subr.mxu1 %v1463_v0 }
 0x39a   :  { %1287 = vmatpush3.msra.mxu1 %v1524_v12 }
 0x39b   :  { %1288 = vmatprep.subr.mxu1 %v1463_v0 }
 0x39c   :  { %1289 = vmatpush3.msra.mxu1 %v1528_v14 }
 0x39d   :  { %1290 = vmatprep.subr.mxu1 %v1463_v0 }
 0x39e   :  { %1291 = vmatpush3.msra.mxu1 %v1532_v16 }
 0x39f   :  { %1292 = vmatprep.subr.mxu1 %v1463_v0 }
 0x3a0   :  { %1293 = vmatpush3.msra.mxu1 %v1536_v18 }
 0x3a1   :  { %1294 = vmatprep.subr.mxu1 %v1463_v0 }
 0x3a2   :  { %1295 = vmatpush3.msra.mxu1 %v1540_v20 }
 0x3a3   :  { %1296 = vmatprep.subr.mxu1 %v1463_v0 }
 0x3a4   :  { %1297 = vmatpush3.msra.mxu1 %v1544_v22 }
 0x3a5   :  { %1298 = vmatprep.subr.mxu1 %v1463_v0 }
 0x3a6   :  { %1299 = vmatpush3.msra.mxu1 %v1548_v24 }
 0x3a7   :  { %1300 = vmatprep.subr.mxu1 %v1463_v0 }
 0x3a8   :  { %1301 = vmatpush3.msra.mxu1 %v1552_v26 }
 0x3a9   :  { %1302 = vmatprep.subr.mxu1 %v1463_v0 }
 0x3aa   :  { %1303 = vmatpush3.msra.mxu1 %v1556_v28 }
 0x3ab   :  { %1304 = vmatprep.subr.mxu1 %v1463_v0 }
 0x3ac   :  { %1305 = vmatpush3.msra.mxu1 %v1561_v31 }
 0x3ad   :  { %1306 = vmatprep.subr.mxu1 %v1463_v0 }
 0x3ae   :  { %1307 = vmatpush3.msra.mxu1 %v1564_v33 }
 0x44f   :  { %v592_v15 = vpop.f32.mrf.mxu1 }
 0x450   :  { %v596_v17 = vadd.f32 %v592_v15, %v179_v13 }
 0x451   :  { %v1240_v19 = vpop.f32.mrf.mxu1 }
 0x452   :  { %1362 = vtanh.f32 %v596_v17 }
 0x45f   :  { %v1363_v21 = vpop.eup %1362 }
 0x460   :  { %599 = vst [vmem:[#allocation10 + $0x20] sm:$0xff] %v1363_v21  ;;  %1274 = vmatmul.mubr.f32.vlgmr.msra.gmra.mxu0 %v1363_v21 }
 0x461   :  { %1312 = vmatpush3.msra.mxu0 %v1506_v3  ;;  %1343 = vmatprep.mubr.msk.f32.mxu0 %vm1464_vm0, %v1463_v0  ;;  %v184_v3 = vadd.f32 %v1682_v51, %v1643_v43 }
 0x462   :  { %1313 = vmatprep.subr.mxu0 %v1463_v0 }
 0x463   :  { %1314 = vmatpush3.msra.mxu0 %v1509_v4 }
 0x464   :  { %1315 = vmatprep.subr.mxu0 %v1463_v0 }
 0x465   :  { %1316 = vmatpush3.msra.mxu0 %v1512_v6 }
 0x466   :  { %1317 = vmatprep.subr.mxu0 %v1463_v0 }
 0x467   :  { %1318 = vmatpush3.msra.mxu0 %v1516_v8 }
 0x468   :  { %1319 = vmatprep.subr.mxu0 %v1463_v0 }
 0x469   :  { %1320 = vmatpush3.msra.mxu0 %v1520_v10 }
 0x46a   :  { %1321 = vmatprep.subr.mxu0 %v1463_v0 }
 0x46b   :  { %1322 = vmatpush3.msra.mxu0 %v1524_v12  ;;  %v189_v12 = vadd.f32 %v1643_v43, %v1688_v54 }
 0x46c   :  { %1323 = vmatprep.subr.mxu0 %v1463_v0 }
 0x46d   :  { %1324 = vmatpush3.msra.mxu0 %v1528_v14 }
 0x46e   :  { %1325 = vmatprep.subr.mxu0 %v1463_v0 }
 0x46f   :  { %1326 = vmatpush3.msra.mxu0 %v1532_v16 }
 0x470   :  { %1327 = vmatprep.subr.mxu0 %v1463_v0 }
 0x471   :  { %1328 = vmatpush3.msra.mxu0 %v1536_v18 }
 0x472   :  { %1329 = vmatprep.subr.mxu0 %v1463_v0 }
 0x473   :  { %1330 = vmatpush3.msra.mxu0 %v1540_v20  ;;  %v194_v20 = vadd.f32 %v1686_v53, %v1643_v43 }
 0x474   :  { %1331 = vmatprep.subr.mxu0 %v1463_v0 }
 0x475   :  { %1332 = vmatpush3.msra.mxu0 %v1544_v22 }
 0x476   :  { %1333 = vmatprep.subr.mxu0 %v1463_v0 }
 0x477   :  { %1334 = vmatpush3.msra.mxu0 %v1548_v24 }
 0x478   :  { %1335 = vmatprep.subr.mxu0 %v1463_v0 }
 0x479   :  { %1336 = vmatpush3.msra.mxu0 %v1552_v26 }
 0x47a   :  { %1337 = vmatprep.subr.mxu0 %v1463_v0 }
 0x47b   :  { %1338 = vmatpush3.msra.mxu0 %v1556_v28 }
 0x47c   :  { %1339 = vmatprep.subr.mxu0 %v1463_v0 }
 0x47d   :  { %1340 = vmatpush3.msra.mxu0 %v1561_v31 }
 0x47e   :  { %1341 = vmatprep.subr.mxu0 %v1463_v0 }
 0x47f   :  { %1342 = vmatpush3.msra.mxu0 %v1564_v33 }
 0x520   :  { %v668_v4 = vpop.f32.mrf.mxu0 }
 0x521   :  { %v672_v6 = vadd.f32 %v668_v4, %v184_v3 }
 0x522   :  { %v1275_v8 = vpop.f32.mrf.mxu0 }
 0x523   :  { %1364 = vtanh.f32 %v672_v6 }
 0x530   :  { %v1365_v10 = vpop.eup %1364 }
 0x531   :  { %675 = vst [vmem:[#allocation10 + $0x28] sm:$0xff] %v1365_v10  ;;  %1309 = vmatmul.mubr.f32.vlgmr.msra.gmra.mxu1 %v1365_v10 }
 0x5f1   :  { %v744_v14 = vpop.f32.mrf.mxu1 }
 0x5f2   :  { %v748_v16 = vadd.f32 %v744_v14, %v189_v12 }
 0x5f3   :  { %v1310_v18 = vpop.f32.mrf.mxu1 }
 0x5f4   :  { %1366 = vtanh.f32 %v748_v16 }
 0x601   :  { %v1367_v0 = vpop.eup %1366 }
 0x602   :  { %751 = vst [vmem:[#allocation10 + $0x30] sm:$0xff] %v1367_v0  ;;  %1344 = vmatmul.mubr.f32.vlgmr.msra.gmra.mxu0 %v1367_v0 }
 0x6c2   :  { %v820_v22 = vpop.f32.mrf.mxu0 }
 0x6c3   :  { %v824_v23 = vadd.f32 %v820_v22, %v194_v20 }
 0x6c4   :  { %v1345_v24 = vpop.f32.mrf.mxu0 }
 0x6c5   :  { %1368 = vtanh.f32 %v824_v23 }
 0x6d2   :  { %v1369_v25 = vpop.eup %1368 }
 0x6d3   :  { %827 = vst [vmem:[#allocation10 + $0x38] sm:$0xff] %v1369_v25 }
 0x6d4   :  { %1441 = shalt.err (!%p1438_p5)
}
 0x6d5   :  { %840 = dma.vmem_to_hbm [thread:$0]  %s835_s5, 1024, %s1846_s4, [#allocation9], %s1459_s18, %s1459_s18, %s1460_s19  }
 0x6d6   :  { %1456 = dma.done.wait [#allocation9], 1024  }
 0x6d7   :  { %1457 = vsyncadd [#allocation9], 4294966272 }
 0x6d8   :  { %844 = vsyncpa [#allocation8], 1 }
 0x6d9   :  { %845 = vsyncpa [#allocation9], 1 }
 0x6da   :  { %846 = vsyncmov [#allocation6] }
 0x6dd   :  { %s847_s9 = vpop.sfrf %846 }
 0x6de   :  { %p860_p6 = scmp.ne.s32.totalorder %s847_s9, 0 }
 0x6e0   :  { %851 = shalt.err (%p860_p6)  }
 0x6e1   :  { %853 = vsyncmov [#allocation6 + $0x1] }
 0x6e4   :  { %s854_s10 = vpop.sfrf %853 }
 0x6e5   :  { %p861_p7 = scmp.ne.s32.totalorder %s854_s10, 0 }
 0x6e7   :  { %858 = shalt.err (%p861_p7)  }

</bundles_post_ra>
